<compile_context>
chip_gen: v6e
topology: v6e:2x2x1
jax: 0.10.0
libtpu: 0.0.40
codegen_flags: <defaults>
</compile_context>

<pallas_src>
import functools

import jax
import jax.numpy as jnp
from jax import lax
from jax.experimental import pallas as pl
from jax.experimental.pallas import tpu as pltpu

LANE = 128
NUM_CORE_SPLITS = 2               # v7x has 2 TensorCores; harmless on v5e/v6e
TILE_BYTES_PER_STREAM = 4 << 20   # ~4 MiB per input per pipeline buffer
UNROLL = 8


def _sublane_for(dtype):
    itemsize = jnp.dtype(dtype).itemsize
    return {4: 8, 2: 16, 1: 32}.get(itemsize, 8)


def _edge_loss_kernel(x_ref, t_ref, out_ref, *, n_valid_chunks):
    """Grid (core_split, tiles_per_core).

    out_ref block (1, 4, S, LANE) f32 is resident across the tile axis and acts
    as the per-core accumulator:
      [:,0] pos count, [:,1] neg count, [:,2] sum bce|pos, [:,3] sum bce|neg
    """
    p = pl.program_id(0)
    k = pl.program_id(1)
    cpt, s, _ = x_ref.shape          # chunks per tile, sublanes, lanes

    @pl.when(k == 0)
    def _init():
        out_ref[...] = jnp.zeros_like(out_ref)

    # Intended (unclamped) tile index: the input index_map clamps dead tiles to
    # the last real block, so the validity mask must come from the program ids.
    start_chunk = (p * pl.num_programs(1) + k) * cpt

    def accumulate(masked):
        def body(c, carry):
            ps, ns, sps, sns = carry
            t = t_ref[c]                            # native dtype, (S, LANE)
            x = x_ref[c].astype(jnp.float32)        # (S, LANE)
            pos_b = t == 1
            neg_b = t == 0
            if masked:
                valid = (start_chunk + c) < n_valid_chunks
                pos_b = jnp.logical_and(pos_b, valid)
                neg_b = jnp.logical_and(neg_b, valid)
                x = jnp.where(valid, x, 0.0)        # OOB garbage may be inf/nan
            pos = pos_b.astype(jnp.float32)
            neg = neg_b.astype(jnp.float32)
            # Stable bce_with_logits; `pos` doubles as the target value, valid
            # because elements with target not in {0,1} carry weight 0 anyway.
            bce = jnp.maximum(x, 0.0) - x * pos + jnp.log1p(jnp.exp(-jnp.abs(x)))
            return (ps + pos, ns + neg, sps + bce * pos, sns + bce * neg)

        zero = jnp.zeros((s, LANE), jnp.float32)
        ps, ns, sps, sns = lax.fori_loop(
            0, cpt, body, (zero, zero, zero, zero), unroll=min(UNROLL, cpt))
        out_ref[0, 0, :, :] += ps
        out_ref[0, 1, :, :] += ns
        out_ref[0, 2, :, :] += sps
        out_ref[0, 3, :, :] += sns

    tile_end = start_chunk + cpt

    @pl.when(tile_end <= n_valid_chunks)   # fully valid tile: zero masking cost
    def _full_tile():
        accumulate(masked=False)

    @pl.when(tile_end > n_valid_chunks)    # ragged last tile / dead split tile
    def _ragged_tile():
        accumulate(masked=True)


def edge_loss_2d(inputs, targets, edge_weight=1.0):
    """Pallas implementation of EdgeLoss2d.forward for NCHW inputs/targets."""
    assert inputs.shape == targets.shape
    total = 1
    for d in inputs.shape:
        total *= d

    x_itemsize = jnp.dtype(inputs.dtype).itemsize
    t_itemsize = jnp.dtype(targets.dtype).itemsize
    sublane = max(_sublane_for(inputs.dtype), _sublane_for(targets.dtype))
    chunk_elems = sublane * LANE

    x = inputs.reshape(-1)
    t = targets.reshape(-1)
    n_chunks = pl.cdiv(total, chunk_elems)
    padded = n_chunks * chunk_elems
    if padded != total:
        # TODO(synk): the ragged final chunk could also be masked in-kernel to
        # make this fully copy-free; the pad is at most one (sublane,128) chunk.
        x = jnp.pad(x, (0, padded - total))
        t = jnp.pad(t, (0, padded - total), constant_values=2)   # 2 -> "ignore"

    x3 = x.reshape(n_chunks, sublane, LANE)
    t3 = t.reshape(n_chunks, sublane, LANE)

    x_chunk_bytes = chunk_elems * x_itemsize
    t_chunk_bytes = chunk_elems * t_itemsize
    chunks_per_tile = max(
        1, min(n_chunks,
               TILE_BYTES_PER_STREAM // max(x_chunk_bytes, t_chunk_bytes)))
    tiles_real = pl.cdiv(n_chunks, chunks_per_tile)
    tiles_per_core = pl.cdiv(tiles_real, NUM_CORE_SPLITS)
    max_block = tiles_real - 1

    def in_index_map(p, k):
        # Clamp so a dead tile of the 2-way split never starts fully OOB; the
        # kernel masks its (duplicate) data via the unclamped program ids.
        return (jnp.minimum(p * tiles_per_core + k, max_block), 0, 0)

    tile_bytes = chunks_per_tile * (x_chunk_bytes + t_chunk_bytes)
    vmem_limit = int(2 * tile_bytes + (4 << 20))   # double-buffered streams + slack

    kernel = functools.partial(_edge_loss_kernel, n_valid_chunks=n_chunks)

    parts = pl.pallas_call(
        kernel,
        out_shape=jax.ShapeDtypeStruct(
            (NUM_CORE_SPLITS, 4, sublane, LANE), jnp.float32),
        grid_spec=pltpu.PrefetchScalarGridSpec(
            num_scalar_prefetch=0,
            grid=(NUM_CORE_SPLITS, tiles_per_core),
            in_specs=[
                pl.BlockSpec((chunks_per_tile, sublane, LANE), in_index_map),
                pl.BlockSpec((chunks_per_tile, sublane, LANE), in_index_map),
            ],
            out_specs=pl.BlockSpec((1, 4, sublane, LANE),
                                   lambda p, k: (p, 0, 0, 0)),
        ),
        compiler_params=pltpu.CompilerParams(
            dimension_semantics=("parallel", "arbitrary"),
            vmem_limit_bytes=vmem_limit),
        cost_estimate=pl.CostEstimate(
            flops=10 * padded,
            transcendentals=2 * padded,
            bytes_accessed=padded * (x_itemsize + t_itemsize)),
    )(x3, t3)

    # Tiny cross-core / cross-lane combine in the wrapper (8K floats).
    sums = jnp.sum(parts, axis=(0, 2, 3))                     # (4,)
    pos_num, neg_num, s_pos, s_neg = sums[0], sums[1], sums[2], sums[3]
    sum_num = pos_num + neg_num
    weighted = (neg_num * s_pos + jnp.float32(1.1) * pos_num * s_neg) / sum_num
    return (jnp.float32(edge_weight) / jnp.float32(total)) * weighted


def edge_loss_2d_ref(inputs, targets, edge_weight=1.0):
    """Pure-JAX reference matching the PyTorch module."""
    x = inputs.astype(jnp.float32).reshape(-1)
    t = targets.astype(jnp.float32).reshape(-1)
    pos_num = jnp.sum(t == 1.0).astype(jnp.float32)
    neg_num = jnp.sum(t == 0.0).astype(jnp.float32)
    sum_num = pos_num + neg_num
    w = jnp.where(t == 1.0, neg_num / sum_num,
                  jnp.where(t == 0.0, pos_num * 1.1 / sum_num, 0.0))
    bce = jnp.maximum(x, 0.0) - x * t + jnp.log1p(jnp.exp(-jnp.abs(x)))
    return edge_weight * jnp.mean(w * bce)


if __name__ == "__main__":
    key = jax.random.PRNGKey(0)
    k1, k2 = jax.random.split(key)

    n, c, h, w = 2, 4, 16, 16
    inputs = jax.random.normal(k1, (n, c, h, w), dtype=jnp.float32)
    # targets in {0, 1, 2}: 0 = neg, 1 = pos, 2 = ignore (>1)
    targets = jax.random.randint(k2, (n, c, h, w), 0, 3).astype(jnp.float32)

    loss = edge_loss_2d(inputs, targets, edge_weight=1.0)
    jax.block_until_ready(loss)

    ref = edge_loss_2d_ref(inputs, targets, edge_weight=1.0)
    assert jnp.allclose(loss, ref, rtol=1e-4, atol=1e-6), (loss, ref)

    print("KERNEL_OK")
</pallas_src>

<mosaic_0001>
module attributes {stable_mosaic.version = 11 : i64} {
  func.func @_edge_loss_kernel(%arg0: i32, %arg1: i32, %arg2: memref<2x8x128xf32, #tpu.memory_space<vmem>>, %arg3: memref<2x8x128xf32, #tpu.memory_space<vmem>>, %arg4: memref<1x4x8x128xf32, #tpu.memory_space<vmem>>) attributes {dimension_semantics = [#tpu.dimension_semantics<parallel>, #tpu.dimension_semantics<arbitrary>], iteration_bounds = array<i64: 2, 1>, scalar_prefetch = 0 : i64, scratch_operands = 0 : i64, tpu.core_type = #tpu.core_type<tc>, window_params = [{transform_indices = @transform_0, window_bounds = array<i64: 2, 8, 128>}, {transform_indices = @transform_1, window_bounds = array<i64: 2, 8, 128>}, {transform_indices = @transform_2, window_bounds = array<i64: 1, 4, 8, 128>}]} {
    %c0_i32 = arith.constant 0 : i32
    %0 = arith.cmpi eq, %arg1, %c0_i32 : i32
    %1 = arith.extui %0 : i1 to i32
    %c0_i32_0 = arith.constant 0 : i32
    %2 = arith.cmpi ne, %1, %c0_i32_0 : i32
    scf.if %2 {
      %cst = arith.constant 0.000000e+00 : f32
      %13 = vector.broadcast %cst : f32 to vector<1x4x8x128xf32>
      %c0 = arith.constant 0 : index
      %c0_6 = arith.constant 0 : index
      %c0_7 = arith.constant 0 : index
      %c0_8 = arith.constant 0 : index
      %14 = vector.load %arg4[%c0, %c0_6, %c0_7, %c0_8] : memref<1x4x8x128xf32, #tpu.memory_space<vmem>>, vector<1x4x8x128xf32>
      tpu.vector_store %arg4[%c0, %c0_6, %c0_7, %c0_8], %13 {strides = array<i32>} : memref<1x4x8x128xf32, #tpu.memory_space<vmem>>, vector<1x4x8x128xf32>,
    } else {
    }
    %c1_i32 = arith.constant 1 : i32
    %3 = arith.muli %arg0, %c1_i32 : i32
    %4 = arith.addi %3, %arg1 : i32
    %c2_i32 = arith.constant 2 : i32
    %5 = arith.muli %4, %c2_i32 : i32
    %c2_i32_1 = arith.constant 2 : i32
    %6 = arith.addi %5, %c2_i32_1 : i32
    %c2_i32_2 = arith.constant 2 : i32
    %7 = arith.cmpi sle, %6, %c2_i32_2 : i32
    %8 = arith.extui %7 : i1 to i32
    %c0_i32_3 = arith.constant 0 : i32
    %9 = arith.cmpi ne, %8, %c0_i32_3 : i32
    scf.if %9 {
      %cst = arith.constant 0.000000e+00 : f32
      %13 = vector.broadcast %cst : f32 to vector<8x128xf32>
      %c0_i32_6 = arith.constant 0 : i32
      %14 = arith.index_cast %c0_i32_6 : i32 to index
      %c0 = arith.constant 0 : index
      %c0_7 = arith.constant 0 : index
      %15 = vector.load %arg3[%14, %c0, %c0_7] : memref<2x8x128xf32, #tpu.memory_space<vmem>>, vector<1x8x128xf32>
      %16 = vector.shape_cast %15 : vector<1x8x128xf32> to vector<8x128xf32>
      %17 = arith.index_cast %c0_i32_6 : i32 to index
      %c0_8 = arith.constant 0 : index
      %c0_9 = arith.constant 0 : index
      %18 = vector.load %arg2[%17, %c0_8, %c0_9] : memref<2x8x128xf32, #tpu.memory_space<vmem>>, vector<1x8x128xf32>
      %19 = vector.shape_cast %18 : vector<1x8x128xf32> to vector<8x128xf32>
      %cst_10 = arith.constant 1.000000e+00 : f32
      %20 = vector.broadcast %cst_10 : f32 to vector<8x128xf32>
      %21 = arith.cmpf oeq, %16, %20 : vector<8x128xf32>
      %cst_11 = arith.constant 0.000000e+00 : f32
      %22 = vector.broadcast %cst_11 : f32 to vector<8x128xf32>
      %23 = arith.cmpf oeq, %16, %22 : vector<8x128xf32>
      %24 = arith.extui %21 : vector<8x128xi1> to vector<8x128xi32>
      %25 = arith.sitofp %24 : vector<8x128xi32> to vector<8x128xf32>
      %26 = arith.extui %23 : vector<8x128xi1> to vector<8x128xi32>
      %27 = arith.sitofp %26 : vector<8x128xi32> to vector<8x128xf32>
      %cst_12 = arith.constant 0.000000e+00 : f32
      %28 = vector.broadcast %cst_12 : f32 to vector<8x128xf32>
      %29 = arith.maximumf %19, %28 : vector<8x128xf32>
      %30 = arith.mulf %19, %25 : vector<8x128xf32>
      %31 = arith.subf %29, %30 : vector<8x128xf32>
      %32 = math.absf %19 : vector<8x128xf32>
      %cst_13 = arith.constant 0.000000e+00 : f32
      %33 = vector.broadcast %cst_13 : f32 to vector<8x128xf32>
      %34 = arith.subf %33, %32 : vector<8x128xf32>
      %35 = math.exp %34 : vector<8x128xf32>
      %36 = math.log1p %35 : vector<8x128xf32>
      %37 = arith.addf %31, %36 : vector<8x128xf32>
      %38 = arith.addf %13, %25 : vector<8x128xf32>
      %39 = arith.addf %13, %27 : vector<8x128xf32>
      %40 = arith.mulf %37, %25 : vector<8x128xf32>
      %41 = arith.addf %13, %40 : vector<8x128xf32>
      %42 = arith.mulf %37, %27 : vector<8x128xf32>
      %43 = arith.addf %13, %42 : vector<8x128xf32>
      %c1_i32_14 = arith.constant 1 : i32
      %44 = arith.index_cast %c1_i32_14 : i32 to index
      %c0_15 = arith.constant 0 : index
      %c0_16 = arith.constant 0 : index
      %45 = vector.load %arg3[%44, %c0_15, %c0_16] : memref<2x8x128xf32, #tpu.memory_space<vmem>>, vector<1x8x128xf32>
      %46 = vector.shape_cast %45 : vector<1x8x128xf32> to vector<8x128xf32>
      %47 = arith.index_cast %c1_i32_14 : i32 to index
      %c0_17 = arith.constant 0 : index
      %c0_18 = arith.constant 0 : index
      %48 = vector.load %arg2[%47, %c0_17, %c0_18] : memref<2x8x128xf32, #tpu.memory_space<vmem>>, vector<1x8x128xf32>
      %49 = vector.shape_cast %48 : vector<1x8x128xf32> to vector<8x128xf32>
      %cst_19 = arith.constant 1.000000e+00 : f32
      %50 = vector.broadcast %cst_19 : f32 to vector<8x128xf32>
      %51 = arith.cmpf oeq, %46, %50 : vector<8x128xf32>
      %cst_20 = arith.constant 0.000000e+00 : f32
      %52 = vector.broadcast %cst_20 : f32 to vector<8x128xf32>
      %53 = arith.cmpf oeq, %46, %52 : vector<8x128xf32>
      %54 = arith.extui %51 : vector<8x128xi1> to vector<8x128xi32>
      %55 = arith.sitofp %54 : vector<8x128xi32> to vector<8x128xf32>
      %56 = arith.extui %53 : vector<8x128xi1> to vector<8x128xi32>
      %57 = arith.sitofp %56 : vector<8x128xi32> to vector<8x128xf32>
      %cst_21 = arith.constant 0.000000e+00 : f32
      %58 = vector.broadcast %cst_21 : f32 to vector<8x128xf32>
      %59 = arith.maximumf %49, %58 : vector<8x128xf32>
      %60 = arith.mulf %49, %55 : vector<8x128xf32>
      %61 = arith.subf %59, %60 : vector<8x128xf32>
      %62 = math.absf %49 : vector<8x128xf32>
      %cst_22 = arith.constant 0.000000e+00 : f32
      %63 = vector.broadcast %cst_22 : f32 to vector<8x128xf32>
      %64 = arith.subf %63, %62 : vector<8x128xf32>
      %65 = math.exp %64 : vector<8x128xf32>
      %66 = math.log1p %65 : vector<8x128xf32>
      %67 = arith.addf %61, %66 : vector<8x128xf32>
      %68 = arith.addf %38, %55 : vector<8x128xf32>
      %69 = arith.addf %39, %57 : vector<8x128xf32>
      %70 = arith.mulf %67, %55 : vector<8x128xf32>
      %71 = arith.addf %41, %70 : vector<8x128xf32>
      %72 = arith.mulf %67, %57 : vector<8x128xf32>
      %73 = arith.addf %43, %72 : vector<8x128xf32>
      %c2_i32_23 = arith.constant 2 : i32
      %c0_24 = arith.constant 0 : index
      %c0_25 = arith.constant 0 : index
      %c0_26 = arith.constant 0 : index
      %c0_27 = arith.constant 0 : index
      %74 = vector.load %arg4[%c0_24, %c0_25, %c0_26, %c0_27] : memref<1x4x8x128xf32, #tpu.memory_space<vmem>>, vector<1x1x8x128xf32>
      %75 = vector.shape_cast %74 : vector<1x1x8x128xf32> to vector<8x128xf32>
      %76 = arith.addf %75, %68 : vector<8x128xf32>
      %c0_28 = arith.constant 0 : index
      %c0_29 = arith.constant 0 : index
      %c0_30 = arith.constant 0 : index
      %c0_31 = arith.constant 0 : index
      %77 = vector.load %arg4[%c0_28, %c0_29, %c0_30, %c0_31] : memref<1x4x8x128xf32, #tpu.memory_space<vmem>>, vector<1x1x8x128xf32>
      %78 = vector.shape_cast %77 : vector<1x1x8x128xf32> to vector<8x128xf32>
      %79 = vector.shape_cast %76 : vector<8x128xf32> to vector<1x1x8x128xf32>
      tpu.vector_store %arg4[%c0_28, %c0_29, %c0_30, %c0_31], %79 {strides = array<i32>} : memref<1x4x8x128xf32, #tpu.memory_space<vmem>>, vector<1x1x8x128xf32>,
      %c0_32 = arith.constant 0 : index
      %c1 = arith.constant 1 : index
      %c0_33 = arith.constant 0 : index
      %c0_34 = arith.constant 0 : index
      %80 = vector.load %arg4[%c0_32, %c1, %c0_33, %c0_34] : memref<1x4x8x128xf32, #tpu.memory_space<vmem>>, vector<1x1x8x128xf32>
      %81 = vector.shape_cast %80 : vector<1x1x8x128xf32> to vector<8x128xf32>
      %82 = arith.addf %81, %69 : vector<8x128xf32>
      %c0_35 = arith.constant 0 : index
      %c1_36 = arith.constant 1 : index
      %c0_37 = arith.constant 0 : index
      %c0_38 = arith.constant 0 : index
      %83 = vector.load %arg4[%c0_35, %c1_36, %c0_37, %c0_38] : memref<1x4x8x128xf32, #tpu.memory_space<vmem>>, vector<1x1x8x128xf32>
      %84 = vector.shape_cast %83 : vector<1x1x8x128xf32> to vector<8x128xf32>
      %85 = vector.shape_cast %82 : vector<8x128xf32> to vector<1x1x8x128xf32>
      tpu.vector_store %arg4[%c0_35, %c1_36, %c0_37, %c0_38], %85 {strides = array<i32>} : memref<1x4x8x128xf32, #tpu.memory_space<vmem>>, vector<1x1x8x128xf32>,
      %c0_39 = arith.constant 0 : index
      %c2 = arith.constant 2 : index
      %c0_40 = arith.constant 0 : index
      %c0_41 = arith.constant 0 : index
      %86 = vector.load %arg4[%c0_39, %c2, %c0_40, %c0_41] : memref<1x4x8x128xf32, #tpu.memory_space<vmem>>, vector<1x1x8x128xf32>
      %87 = vector.shape_cast %86 : vector<1x1x8x128xf32> to vector<8x128xf32>
      %88 = arith.addf %87, %71 : vector<8x128xf32>
      %c0_42 = arith.constant 0 : index
      %c2_43 = arith.constant 2 : index
      %c0_44 = arith.constant 0 : index
      %c0_45 = arith.constant 0 : index
      %89 = vector.load %arg4[%c0_42, %c2_43, %c0_44, %c0_45] : memref<1x4x8x128xf32, #tpu.memory_space<vmem>>, vector<1x1x8x128xf32>
      %90 = vector.shape_cast %89 : vector<1x1x8x128xf32> to vector<8x128xf32>
      %91 = vector.shape_cast %88 : vector<8x128xf32> to vector<1x1x8x128xf32>
      tpu.vector_store %arg4[%c0_42, %c2_43, %c0_44, %c0_45], %91 {strides = array<i32>} : memref<1x4x8x128xf32, #tpu.memory_space<vmem>>, vector<1x1x8x128xf32>,
      %c0_46 = arith.constant 0 : index
      %c3 = arith.constant 3 : index
      %c0_47 = arith.constant 0 : index
      %c0_48 = arith.constant 0 : index
      %92 = vector.load %arg4[%c0_46, %c3, %c0_47, %c0_48] : memref<1x4x8x128xf32, #tpu.memory_space<vmem>>, vector<1x1x8x128xf32>
      %93 = vector.shape_cast %92 : vector<1x1x8x128xf32> to vector<8x128xf32>
      %94 = arith.addf %93, %73 : vector<8x128xf32>
      %c0_49 = arith.constant 0 : index
      %c3_50 = arith.constant 3 : index
      %c0_51 = arith.constant 0 : index
      %c0_52 = arith.constant 0 : index
      %95 = vector.load %arg4[%c0_49, %c3_50, %c0_51, %c0_52] : memref<1x4x8x128xf32, #tpu.memory_space<vmem>>, vector<1x1x8x128xf32>
      %96 = vector.shape_cast %95 : vector<1x1x8x128xf32> to vector<8x128xf32>
      %97 = vector.shape_cast %94 : vector<8x128xf32> to vector<1x1x8x128xf32>
      tpu.vector_store %arg4[%c0_49, %c3_50, %c0_51, %c0_52], %97 {strides = array<i32>} : memref<1x4x8x128xf32, #tpu.memory_space<vmem>>, vector<1x1x8x128xf32>,
    } else {
    }
    %c2_i32_4 = arith.constant 2 : i32
    %10 = arith.cmpi sgt, %6, %c2_i32_4 : i32
    %11 = arith.extui %10 : i1 to i32
    %c0_i32_5 = arith.constant 0 : i32
    %12 = arith.cmpi ne, %11, %c0_i32_5 : i32
    scf.if %12 {
      %cst = arith.constant 0.000000e+00 : f32
      %13 = vector.broadcast %cst : f32 to vector<8x128xf32>
      %c0_i32_6 = arith.constant 0 : i32
      %14 = arith.index_cast %c0_i32_6 : i32 to index
      %c0 = arith.constant 0 : index
      %c0_7 = arith.constant 0 : index
      %15 = vector.load %arg3[%14, %c0, %c0_7] : memref<2x8x128xf32, #tpu.memory_space<vmem>>, vector<1x8x128xf32>
      %16 = vector.shape_cast %15 : vector<1x8x128xf32> to vector<8x128xf32>
      %17 = arith.index_cast %c0_i32_6 : i32 to index
      %c0_8 = arith.constant 0 : index
      %c0_9 = arith.constant 0 : index
      %18 = vector.load %arg2[%17, %c0_8, %c0_9] : memref<2x8x128xf32, #tpu.memory_space<vmem>>, vector<1x8x128xf32>
      %19 = vector.shape_cast %18 : vector<1x8x128xf32> to vector<8x128xf32>
      %cst_10 = arith.constant 1.000000e+00 : f32
      %20 = vector.broadcast %cst_10 : f32 to vector<8x128xf32>
      %21 = arith.cmpf oeq, %16, %20 : vector<8x128xf32>
      %cst_11 = arith.constant 0.000000e+00 : f32
      %22 = vector.broadcast %cst_11 : f32 to vector<8x128xf32>
      %23 = arith.cmpf oeq, %16, %22 : vector<8x128xf32>
      %24 = arith.addi %5, %c0_i32_6 : i32
      %c2_i32_12 = arith.constant 2 : i32
      %25 = arith.cmpi slt, %24, %c2_i32_12 : i32
      %26 = vector.broadcast %25 : i1 to vector<8x128xi1>
      %27 = arith.andi %21, %26 : vector<8x128xi1>
      %28 = vector.broadcast %25 : i1 to vector<8x128xi1>
      %29 = arith.andi %23, %28 : vector<8x128xi1>
      %cst_13 = arith.constant 0.000000e+00 : f32
      %30 = vector.broadcast %cst_13 : f32 to vector<8x128xf32>
      %31 = arith.select %25, %19, %30 : vector<8x128xf32>
      %32 = arith.extui %27 : vector<8x128xi1> to vector<8x128xi32>
      %33 = arith.sitofp %32 : vector<8x128xi32> to vector<8x128xf32>
      %34 = arith.extui %29 : vector<8x128xi1> to vector<8x128xi32>
      %35 = arith.sitofp %34 : vector<8x128xi32> to vector<8x128xf32>
      %cst_14 = arith.constant 0.000000e+00 : f32
      %36 = vector.broadcast %cst_14 : f32 to vector<8x128xf32>
      %37 = arith.maximumf %31, %36 : vector<8x128xf32>
      %38 = arith.mulf %31, %33 : vector<8x128xf32>
      %39 = arith.subf %37, %38 : vector<8x128xf32>
      %40 = math.absf %31 : vector<8x128xf32>
      %cst_15 = arith.constant 0.000000e+00 : f32
      %41 = vector.broadcast %cst_15 : f32 to vector<8x128xf32>
      %42 = arith.subf %41, %40 : vector<8x128xf32>
      %43 = math.exp %42 : vector<8x128xf32>
      %44 = math.log1p %43 : vector<8x128xf32>
      %45 = arith.addf %39, %44 : vector<8x128xf32>
      %46 = arith.addf %13, %33 : vector<8x128xf32>
      %47 = arith.addf %13, %35 : vector<8x128xf32>
      %48 = arith.mulf %45, %33 : vector<8x128xf32>
      %49 = arith.addf %13, %48 : vector<8x128xf32>
      %50 = arith.mulf %45, %35 : vector<8x128xf32>
      %51 = arith.addf %13, %50 : vector<8x128xf32>
      %c1_i32_16 = arith.constant 1 : i32
      %52 = arith.index_cast %c1_i32_16 : i32 to index
      %c0_17 = arith.constant 0 : index
      %c0_18 = arith.constant 0 : index
      %53 = vector.load %arg3[%52, %c0_17, %c0_18] : memref<2x8x128xf32, #tpu.memory_space<vmem>>, vector<1x8x128xf32>
      %54 = vector.shape_cast %53 : vector<1x8x128xf32> to vector<8x128xf32>
      %55 = arith.index_cast %c1_i32_16 : i32 to index
      %c0_19 = arith.constant 0 : index
      %c0_20 = arith.constant 0 : index
      %56 = vector.load %arg2[%55, %c0_19, %c0_20] : memref<2x8x128xf32, #tpu.memory_space<vmem>>, vector<1x8x128xf32>
      %57 = vector.shape_cast %56 : vector<1x8x128xf32> to vector<8x128xf32>
      %cst_21 = arith.constant 1.000000e+00 : f32
      %58 = vector.broadcast %cst_21 : f32 to vector<8x128xf32>
      %59 = arith.cmpf oeq, %54, %58 : vector<8x128xf32>
      %cst_22 = arith.constant 0.000000e+00 : f32
      %60 = vector.broadcast %cst_22 : f32 to vector<8x128xf32>
      %61 = arith.cmpf oeq, %54, %60 : vector<8x128xf32>
      %62 = arith.addi %5, %c1_i32_16 : i32
      %c2_i32_23 = arith.constant 2 : i32
      %63 = arith.cmpi slt, %62, %c2_i32_23 : i32
      %64 = vector.broadcast %63 : i1 to vector<8x128xi1>
      %65 = arith.andi %59, %64 : vector<8x128xi1>
      %66 = vector.broadcast %63 : i1 to vector<8x128xi1>
      %67 = arith.andi %61, %66 : vector<8x128xi1>
      %cst_24 = arith.constant 0.000000e+00 : f32
      %68 = vector.broadcast %cst_24 : f32 to vector<8x128xf32>
      %69 = arith.select %63, %57, %68 : vector<8x128xf32>
      %70 = arith.extui %65 : vector<8x128xi1> to vector<8x128xi32>
      %71 = arith.sitofp %70 : vector<8x128xi32> to vector<8x128xf32>
      %72 = arith.extui %67 : vector<8x128xi1> to vector<8x128xi32>
      %73 = arith.sitofp %72 : vector<8x128xi32> to vector<8x128xf32>
      %cst_25 = arith.constant 0.000000e+00 : f32
      %74 = vector.broadcast %cst_25 : f32 to vector<8x128xf32>
      %75 = arith.maximumf %69, %74 : vector<8x128xf32>
      %76 = arith.mulf %69, %71 : vector<8x128xf32>
      %77 = arith.subf %75, %76 : vector<8x128xf32>
      %78 = math.absf %69 : vector<8x128xf32>
      %cst_26 = arith.constant 0.000000e+00 : f32
      %79 = vector.broadcast %cst_26 : f32 to vector<8x128xf32>
      %80 = arith.subf %79, %78 : vector<8x128xf32>
      %81 = math.exp %80 : vector<8x128xf32>
      %82 = math.log1p %81 : vector<8x128xf32>
      %83 = arith.addf %77, %82 : vector<8x128xf32>
      %84 = arith.addf %46, %71 : vector<8x128xf32>
      %85 = arith.addf %47, %73 : vector<8x128xf32>
      %86 = arith.mulf %83, %71 : vector<8x128xf32>
      %87 = arith.addf %49, %86 : vector<8x128xf32>
      %88 = arith.mulf %83, %73 : vector<8x128xf32>
      %89 = arith.addf %51, %88 : vector<8x128xf32>
      %c2_i32_27 = arith.constant 2 : i32
      %c0_28 = arith.constant 0 : index
      %c0_29 = arith.constant 0 : index
      %c0_30 = arith.constant 0 : index
      %c0_31 = arith.constant 0 : index
      %90 = vector.load %arg4[%c0_28, %c0_29, %c0_30, %c0_31] : memref<1x4x8x128xf32, #tpu.memory_space<vmem>>, vector<1x1x8x128xf32>
      %91 = vector.shape_cast %90 : vector<1x1x8x128xf32> to vector<8x128xf32>
      %92 = arith.addf %91, %84 : vector<8x128xf32>
      %c0_32 = arith.constant 0 : index
      %c0_33 = arith.constant 0 : index
      %c0_34 = arith.constant 0 : index
      %c0_35 = arith.constant 0 : index
      %93 = vector.load %arg4[%c0_32, %c0_33, %c0_34, %c0_35] : memref<1x4x8x128xf32, #tpu.memory_space<vmem>>, vector<1x1x8x128xf32>
      %94 = vector.shape_cast %93 : vector<1x1x8x128xf32> to vector<8x128xf32>
      %95 = vector.shape_cast %92 : vector<8x128xf32> to vector<1x1x8x128xf32>
      tpu.vector_store %arg4[%c0_32, %c0_33, %c0_34, %c0_35], %95 {strides = array<i32>} : memref<1x4x8x128xf32, #tpu.memory_space<vmem>>, vector<1x1x8x128xf32>,
      %c0_36 = arith.constant 0 : index
      %c1 = arith.constant 1 : index
      %c0_37 = arith.constant 0 : index
      %c0_38 = arith.constant 0 : index
      %96 = vector.load %arg4[%c0_36, %c1, %c0_37, %c0_38] : memref<1x4x8x128xf32, #tpu.memory_space<vmem>>, vector<1x1x8x128xf32>
      %97 = vector.shape_cast %96 : vector<1x1x8x128xf32> to vector<8x128xf32>
      %98 = arith.addf %97, %85 : vector<8x128xf32>
      %c0_39 = arith.constant 0 : index
      %c1_40 = arith.constant 1 : index
      %c0_41 = arith.constant 0 : index
      %c0_42 = arith.constant 0 : index
      %99 = vector.load %arg4[%c0_39, %c1_40, %c0_41, %c0_42] : memref<1x4x8x128xf32, #tpu.memory_space<vmem>>, vector<1x1x8x128xf32>
      %100 = vector.shape_cast %99 : vector<1x1x8x128xf32> to vector<8x128xf32>
      %101 = vector.shape_cast %98 : vector<8x128xf32> to vector<1x1x8x128xf32>
      tpu.vector_store %arg4[%c0_39, %c1_40, %c0_41, %c0_42], %101 {strides = array<i32>} : memref<1x4x8x128xf32, #tpu.memory_space<vmem>>, vector<1x1x8x128xf32>,
      %c0_43 = arith.constant 0 : index
      %c2 = arith.constant 2 : index
      %c0_44 = arith.constant 0 : index
      %c0_45 = arith.constant 0 : index
      %102 = vector.load %arg4[%c0_43, %c2, %c0_44, %c0_45] : memref<1x4x8x128xf32, #tpu.memory_space<vmem>>, vector<1x1x8x128xf32>
      %103 = vector.shape_cast %102 : vector<1x1x8x128xf32> to vector<8x128xf32>
      %104 = arith.addf %103, %87 : vector<8x128xf32>
      %c0_46 = arith.constant 0 : index
      %c2_47 = arith.constant 2 : index
      %c0_48 = arith.constant 0 : index
      %c0_49 = arith.constant 0 : index
      %105 = vector.load %arg4[%c0_46, %c2_47, %c0_48, %c0_49] : memref<1x4x8x128xf32, #tpu.memory_space<vmem>>, vector<1x1x8x128xf32>
      %106 = vector.shape_cast %105 : vector<1x1x8x128xf32> to vector<8x128xf32>
      %107 = vector.shape_cast %104 : vector<8x128xf32> to vector<1x1x8x128xf32>
      tpu.vector_store %arg4[%c0_46, %c2_47, %c0_48, %c0_49], %107 {strides = array<i32>} : memref<1x4x8x128xf32, #tpu.memory_space<vmem>>, vector<1x1x8x128xf32>,
      %c0_50 = arith.constant 0 : index
      %c3 = arith.constant 3 : index
      %c0_51 = arith.constant 0 : index
      %c0_52 = arith.constant 0 : index
      %108 = vector.load %arg4[%c0_50, %c3, %c0_51, %c0_52] : memref<1x4x8x128xf32, #tpu.memory_space<vmem>>, vector<1x1x8x128xf32>
      %109 = vector.shape_cast %108 : vector<1x1x8x128xf32> to vector<8x128xf32>
      %110 = arith.addf %109, %89 : vector<8x128xf32>
      %c0_53 = arith.constant 0 : index
      %c3_54 = arith.constant 3 : index
      %c0_55 = arith.constant 0 : index
      %c0_56 = arith.constant 0 : index
      %111 = vector.load %arg4[%c0_53, %c3_54, %c0_55, %c0_56] : memref<1x4x8x128xf32, #tpu.memory_space<vmem>>, vector<1x1x8x128xf32>
      %112 = vector.shape_cast %111 : vector<1x1x8x128xf32> to vector<8x128xf32>
      %113 = vector.shape_cast %110 : vector<8x128xf32> to vector<1x1x8x128xf32>
      tpu.vector_store %arg4[%c0_53, %c3_54, %c0_55, %c0_56], %113 {strides = array<i32>} : memref<1x4x8x128xf32, #tpu.memory_space<vmem>>, vector<1x1x8x128xf32>,
    } else {
    }
    return
  }
  func.func @transform_0(%arg0: i32, %arg1: i32) -> (i32, i32, i32) {
    %c1_i32 = arith.constant 1 : i32
    %0 = arith.muli %arg0, %c1_i32 : i32
    %1 = arith.addi %0, %arg1 : i32
    %c0_i32 = arith.constant 0 : i32
    %2 = arith.minsi %1, %c0_i32 : i32
    %c0_i32_0 = arith.constant 0 : i32
    %c0_i32_1 = arith.constant 0 : i32
    %c0_i32_2 = arith.constant 0 : i32
    return %2, %c0_i32_0, %c0_i32_1 : i32, i32, i32
  }
  func.func @transform_1(%arg0: i32, %arg1: i32) -> (i32, i32, i32) {
    %c1_i32 = arith.constant 1 : i32
    %0 = arith.muli %arg0, %c1_i32 : i32
    %1 = arith.addi %0, %arg1 : i32
    %c0_i32 = arith.constant 0 : i32
    %2 = arith.minsi %1, %c0_i32 : i32
    %c0_i32_0 = arith.constant 0 : i32
    %c0_i32_1 = arith.constant 0 : i32
    %c0_i32_2 = arith.constant 0 : i32
    return %2, %c0_i32_0, %c0_i32_1 : i32, i32, i32
  }
  func.func @transform_2(%arg0: i32, %arg1: i32) -> (i32, i32, i32, i32) {
    %c0_i32 = arith.constant 0 : i32
    %c0_i32_0 = arith.constant 0 : i32
    %c0_i32_1 = arith.constant 0 : i32
    %c0_i32_2 = arith.constant 0 : i32
    return %arg0, %c0_i32, %c0_i32_0, %c0_i32_1 : i32, i32, i32, i32
  }
}

</mosaic_0001>

<bundles_post_ra>
// kernel: tpu_custom_call.1
= control target key start
LH: loop header
LB: loop body
LE: loop exit
PB: predicated region body
PF: predicated region fallthrough
CT: control target
= control target key end

     0   :  { %7 = vsyncpa [#allocation3], 0  ;;  %s1157_s0 = inlined_call_operand.hbm [shape: f32[2,8,128], index: 0, kind: input, shape index: {}]   ;;  %s1158_s1 = inlined_call_operand.hbm [shape: f32[2,8,128], index: 1, kind: input, shape index: {}]   ;;  %s1159_s2 = inlined_call_operand.hbm [shape: f32[2,4,8,128], index: 2, kind: output, shape index: {}]  }
   0x1   :  { %9 = vsyncpa [#allocation3 + $0x1], 0 }
   0x2   :  { %10 = vsyncpa [#allocation6], 0 }
   0x3   :  { %12 = vsyncpa [#allocation6 + $0x1], 0 }
   0x4   :  { %13 = vsyncpa [#allocation4], 0 }
   0x5   :  { %15 = vsyncpa [#allocation4 + $0x1], 0  ;;  %s907_s9 = smov 0   ;;  %s909_s10 = smov 0  }
   0x6   :  { %s911_s11 = smov 0   ;;  %s913_s12 = smov 0  }
   0x7   :  { %s915_s13 = smov 0   ;;  %s917_s14 = smov 0  }
   0x8   :  { %s919_s15 = smov 0   ;;  %s921_s16 = smov 0  }
   0x9 LB: > { %s550_s17 = sadd.s32 4294967295, %s880_s16   ;;  %s551_s18 = sadd.s32 4294967294, %s880_s16   ;;  %s880_s16 = sphi %s921_s16, %s21_s16   ;;  %s876_s15 = sphi %s919_s15, %s1179_s15   ;;  %s872_s14 = sphi %s917_s14, %s1178_s14   ;;  %s868_s13 = sphi %s915_s13, %s1147_s13   ;;  %s864_s12 = sphi %s913_s12, %s1177_s12   ;;  %s860_s11 = sphi %s911_s11, %s1176_s11   ;;  %s856_s10 = sphi %s909_s10, %s1175_s10   ;;  %s852_s9 = sphi %s907_s9, %s1174_s9  }
   0xa   : > { %s33_s19 = sadd.s32 1, %s876_s15  ;;  %p849_p1 = scmp.ne.s32.totalorder %s868_s13, 0 }
   0xb   : > { %p35_p0 = scmp.ge.s32.totalorder %s33_s19, 2  ;;  %p54_p2 = scmp.eq.s32.totalorder %s880_s16, 0 }
   0xc   : > { %p59_p3 = scmp.ne.s32.totalorder %s868_s13, %s864_s12  ;;  %p60_p5 = scmp.eq.s32.totalorder %s550_s17, 0 }
   0xd   : > { %s1181_s19 = smov (%p35_p0, %s33_s19), 0  ;;  %p953_p4 = por %p849_p1, %p54_p2 }
   0xe   : > { %p957_p6 = por %p60_p5, %p59_p3  ;;  %s101_s22 = ssub.s32 %s876_s15, %s1181_s19 }
   0xf   : > { %p102_p7 = scmp.eq.s32.totalorder %s101_s22, 0  ;;  %s104_s23 = sadd.s32 1, %s860_s11 }
  0x10   : > { %s1163_s21 = scalar_select %p957_p6, 1, 0 }
  0x11   : > { %s965_s24 = scalar_select %p102_p7, %s860_s11, %s104_s23  }
  0x12   : > { %p114_p8 = scmp.ne.s32.totalorder %s860_s11, %s856_s10  ;;  %p115_p9 = scmp.eq.s32.totalorder %s550_s17, 1 }
  0x13   : > { %p120_p10 = scmp.ne.s32.totalorder %s856_s10, %s852_s9  ;;  %p121_p11 = scmp.eq.s32.totalorder %s551_s18, 1 }
  0x14   : > { %p971_p12 = por %p115_p9, %p114_p8  ;;  %p616_p1 = scmp.lt.s32.totalorder %s880_s16, 2 }
  0x15   : > { %p976_p0 = por %p121_p11, %p120_p10  ;;  %s882_s27 = smov [#allocation2]  }
  0x16   : > { %s1164_s25 = scalar_select %p971_p12, 1, 0 }
  0x17   : > { %s1165_s26 = scalar_select %p976_p0, 1, 0 }
  0x18   : > { %s155_s28 = sshll.u32 %s882_s27, 4  ;;  %p983_p2 = pnand %p616_p1, %p953_p4  ;;  %s156_s28 = int_to_ptr.vmem [resolvable:$true] %s155_s28 }
  0x19   : > { %s719_s4 = scalar_lea.hbm %s1157_s0, 256 }
  0x1a   : > { %p720_p3 = scmp.ne.s32.totalorder %s1157_s0, %s719_s4  ;;  %p721_p5 = pneg %p983_p2 }
  0x1b   : > { %p726_p8 = scmp.lt.s32.totalorder %s719_s4, %s719_s4 }
  0x1c   : > { %p722_p7 = pnand %p721_p5, %p720_p3 }
  0x1e   : > { %p723_p4 = pneg %p722_p7 }
  0x20   : > { %p728_p9 = pnand %p726_p8, %p723_p4 }
  0x22   : > { %731 = shalt.err (!%p728_p9)
}
  0x23   : > { %s732_s7 = scalar_lea.vmem %s156_s28, 256  ;;  %s739_s8 = scalar_lea.vmem %s156_s28, 512 }
  0x24   : > { %p733_p10 = scmp.ne.s32.totalorder %s156_s28, %s732_s7  ;;  %p740_p13 = scmp.lt.s32.totalorder %s156_s28, %s156_s28 }
  0x25   : > { %p741_p0 = scmp.lt.s32.totalorder %s739_s8, %s732_s7 }
  0x26   : > { %p735_p11 = pnand %p733_p10, %p721_p5 }
  0x27   : > { %p742_p12 = por %p741_p0, %p740_p13 }
  0x28   : > { %p736_p1 = pneg %p735_p11 }
  0x2a   : > { %p743_p6 = pnand %p742_p12, %p736_p1 }
  0x2c   : > { %746 = shalt.err (!%p743_p6)
}
  0x2d   : > { %s883_s12 = smov 128   ;;  %s884_s17 = smov 8  }
  0x2e   : > { %608 = dma.hbm_to_vmem [thread:$0]  (!%p983_p2), %s1157_s0, 256, %s156_s28, [#allocation3], %s883_s12, %s883_s12, %s884_s17  }
  0x2f   : > { %p560_p3 = scmp.ge.s32.totalorder %s880_s16, 1  ;;  %p187_p7 = scmp.lt.s32.totalorder %s880_s16, 3 }
  0x30   : > { %s885_s23 = smov [#allocation5]   ;;  %s747_s4 = scalar_lea.hbm %s1158_s1, 256 }
  0x31   : > { %p1008_p4 = pnand %p560_p3, %p187_p7  ;;  %s179_s27 = sshll.u32 %s885_s23, 4  ;;  %s180_s27 = int_to_ptr.vmem [resolvable:$true] %s179_s27 }
  0x32   : > { %p748_p6 = scmp.ne.s32.totalorder %s1158_s1, %s747_s4  ;;  %p754_p0 = scmp.lt.s32.totalorder %s747_s4, %s747_s4 }
  0x33   : > { %s1167_s22 = scalar_select %p1008_p4, 1, 0 }
  0x34   : > { %p750_p12 = pnand %p748_p6, %p721_p5 }
  0x36   : > { %p751_p13 = pneg %p750_p12 }
  0x38   : > { %p756_p8 = pnand %p754_p0, %p751_p13 }
  0x3a   : > { %759 = shalt.err (!%p756_p8)
}
  0x3b   : > { %s760_s28 = scalar_lea.vmem %s180_s27, 256  ;;  %s767_s7 = scalar_lea.vmem %s180_s27, 512 }
  0x3c   : > { %p761_p9 = scmp.ne.s32.totalorder %s180_s27, %s760_s28  ;;  %p768_p1 = scmp.lt.s32.totalorder %s180_s27, %s180_s27 }
  0x3d   : > { %p769_p3 = scmp.lt.s32.totalorder %s767_s7, %s760_s28 }
  0x3e   : > { %p763_p10 = pnand %p761_p9, %p721_p5 }
  0x3f   : > { %p770_p7 = por %p769_p3, %p768_p1 }
  0x40   : > { %p764_p11 = pneg %p763_p10 }
  0x42   : > { %p771_p4 = pnand %p770_p7, %p764_p11 }
  0x44   : > { %774 = shalt.err (!%p771_p4)
}
  0x45   : > { %611 = dma.hbm_to_vmem [thread:$0]  (!%p983_p2), %s1158_s1, 256, %s180_s27, [#allocation6], %s883_s12, %s883_s12, %s884_s17  }
  0x46   : > { %p1168_p6 = scmp.ne.s32.totalorder %s1167_s22, 0 }
  0x47   : > { %s193_s20 = sand.u32 (!%p1168_p6), 1, %s868_s13   ;;  %p1169_p5 = scmp.ne.s32.totalorder (!%p1168_p6), %s1163_s21, 0 }
  0x48   : > { %191 = sbr.rel (%p1168_p6) target bundleno = 226 (0xe2), region = 28  ;;  %s561_s23 = sshll.u32 (!%p1168_p6), %s193_s20, 4 }
  0x49   : > { %s194_s30 = scalar_lea.sflag (!%p1168_p6), [#allocation3], %s193_s20  ;;  %s1032_s3 = scalar_lea.vmem (!%p1168_p6), [#allocation2], %s561_s23 }
  0x4d   : > { %838 = dma.done.wait (%p1169_p5), %s194_s30, 256  }
  0x4e   : > { %840 = vsyncadd (%p1169_p5), %s194_s30, 4294967040  ;;  %s203_s29 = scalar_lea.sflag [#allocation6], %s193_s20  ;;  %s1038_s4 = scalar_lea.vmem [#allocation5], %s561_s23 }
  0x4f   : > { %842 = dma.done.wait (%p1169_p5), %s203_s29, 256  }
  0x50   : > { %844 = vsyncadd (%p1169_p5), %s203_s29, 4294967040  ;;  %s229_s12 = sand.u32 1, %s856_s10   ;;  %s1046_s17 = sshll.u32 %s872_s14, 1  ;;  %v886_v0 = vmov 0.0  }
  0x51   : > { %s563_s22 = sshll.u32 %s229_s12, 5  ;;  %s250_s27 = sadd.s32 2, %s1046_s17 }
  0x52   : > { %s1051_s5 = scalar_lea.vmem [#allocation7], %s563_s22  ;;  %p565_p2 = scmp.gt.s32.totalorder %s250_s27, 2 }
  0x53   : > { %244 = vst [vmem:[%s1051_s5] sm:$0xff] %v886_v0  ;;  %245 = vst [vmem:[%s1051_s5 + $0x8] sm:$0xff] %v886_v0 }
  0x54   : > { %246 = vst [vmem:[%s1051_s5 + $0x10] sm:$0xff] %v886_v0  ;;  %247 = vst [vmem:[%s1051_s5 + $0x18] sm:$0xff] %v886_v0  ;;  %254 = sbr.rel (%p565_p2) target bundleno = 140 (0x8c), region = 44 }
  0x59   : > { %v255_v1 = vld [vmem:[%s1038_s4] sm:$0xff]  ;;  %v568_v3 = vld [vmem:[%s1038_s4 + $0x8] sm:$0xff]  ;;  %v887_v6 = vmov 0.0  }
  0x5a   : > { %v256_v2 = vld [vmem:[%s1032_s3] sm:$0xff]  ;;  %vm257_vm0 = vcmp.eq.f32.partialorder %v255_v1, 1.0  ;;  %v569_v5 = vld [vmem:[%s1032_s3 + $0x8] sm:$0xff]  ;;  %vm290_vm1 = vcmp.eq.f32.partialorder %v568_v3, 1.0  ;;  %vm258_vm2 = vcmp.eq.f32.partialorder %v255_v1, 0.0  ;;  %vm291_vm3 = vcmp.eq.f32.partialorder %v568_v3, 0.0 }
  0x5b   : > { %v266_v4 = vand.u32 2147483647, %v256_v2  ;;  %v566_v7 = vsel %vm257_vm0, 1.0, %v887_v6  ;;  %v570_v8 = vsel %vm290_vm1, 1.0, %v887_v6  ;;  %v299_v9 = vand.u32 2147483647, %v569_v5 }
  0x5c   : > { %v319_v10 = vld [vmem:[%s1051_s5] sm:$0xff]  ;;  %v313_v12 = vadd.f32 %v570_v8, %v566_v7  ;;  %v567_v16 = vsel %vm258_vm2, 1.0, %v887_v6  ;;  %v571_v17 = vsel %vm291_vm3, 1.0, %v887_v6  ;;  %v572_v18 = vld [vmem:[%s1051_s5 + $0x8] sm:$0xff]  ;;  %v264_v29 = vmul.f32 %v566_v7, %v256_v2  ;;  %v574_v52 = vld [vmem:[%s1051_s5 + $0x10] sm:$0xff] }
  0x5d   : > { %v267_v11 = vsub.f32 0.0, %v266_v4  ;;  %v300_v13 = vsub.f32 0.0, %v299_v9  ;;  %v314_v20 = vadd.f32 %v571_v17, %v567_v16  ;;  %v263_v30 = vmax.f32 %v256_v2, 0.0  ;;  %v576_v53 = vld [vmem:[%s1051_s5 + $0x18] sm:$0xff] }
  0x5e   : > { %v320_v15 = vadd.f32 %v319_v10, %v313_v12  ;;  %v297_v33 = vmul.f32 %v570_v8, %v569_v5  ;;  %v296_v34 = vmax.f32 %v569_v5, 0.0 }
  0x5f   : > { %v268_v14 = vmul.f32 1.442695, %v267_v11  ;;  %v301_v19 = vmul.f32 1.442695, %v300_v13  ;;  %v324_v21 = vadd.f32 %v572_v18, %v314_v20  ;;  %v265_v38 = vsub.f32 %v263_v30, %v264_v29 }
  0x60   : > { %321 = vst [vmem:[%s1051_s5] sm:$0xff] %v320_v15  ;;  %v298_v42 = vsub.f32 %v296_v34, %v297_v33 }
  0x61   : > { %697 = vpow2.f32 %v268_v14  ;;  %573 = vst [vmem:[%s1051_s5 + $0x8] sm:$0xff] %v324_v21 }
  0x62   : > { %699 = vpow2.f32 %v301_v19 }
  0x6e   : > { %v698_v22 = vpop.eup %697 }
  0x6f   : > { %v700_v23 = vpop.eup %699  ;;  %v270_v24 = vadd.f32 1.0, %v698_v22  ;;  %v273_v26 = vmul.f32 -0.5, %v698_v22  ;;  %v276_v31 = vand.u32 2147483647, %v698_v22 }
  0x70   : > { %v303_v25 = vadd.f32 1.0, %v700_v23  ;;  %v306_v27 = vmul.f32 -0.5, %v700_v23  ;;  %v309_v35 = vand.u32 2147483647, %v700_v23 }
  0x71   : > { %701 = vlog2.f32 %v270_v24  ;;  %v274_v28 = vadd.f32 1.0, %v273_v26  ;;  %vm277_vm4 = vcmp.lt.f32.partialorder %v276_v31, 0.0004427343 }
  0x72   : > { %703 = vlog2.f32 %v303_v25  ;;  %v307_v32 = vadd.f32 1.0, %v306_v27  ;;  %vm310_vm5 = vcmp.lt.f32.partialorder %v309_v35, 0.0004427343 }
  0x73   : > { %v275_v36 = vmul.f32 %v698_v22, %v274_v28 }
  0x74   : > { %v308_v39 = vmul.f32 %v700_v23, %v307_v32 }
  0x7e   : > { %v702_v37 = vpop.eup %701 }
  0x7f   : > { %v704_v40 = vpop.eup %703  ;;  %v272_v41 = vmul.f32 0.6931472, %v702_v37 }
  0x80   : > { %v305_v43 = vmul.f32 0.6931472, %v704_v40 }
  0x81   : > { %v278_v44 = vsel %vm277_vm4, %v275_v36, %v272_v41 }
  0x82   : > { %v279_v45 = vadd.f32 %v278_v44, %v265_v38  ;;  %v311_v46 = vsel %vm310_vm5, %v308_v39, %v305_v43 }
  0x83   : > { %v312_v47 = vadd.f32 %v311_v46, %v298_v42 }
  0x84   : > { %v282_v48 = vmul.f32 %v566_v7, %v279_v45  ;;  %v284_v49 = vmul.f32 %v567_v16, %v279_v45 }
  0x85   : > { %v315_v50 = vmul.f32 %v570_v8, %v312_v47  ;;  %v317_v51 = vmul.f32 %v571_v17, %v312_v47 }
  0x87   : > { %v316_v54 = vadd.f32 %v315_v50, %v282_v48  ;;  %v318_v55 = vadd.f32 %v317_v51, %v284_v49 }
  0x89   : > { %v328_v56 = vadd.f32 %v574_v52, %v316_v54  ;;  %v332_v57 = vadd.f32 %v576_v53, %v318_v55 }
  0x8b   : > { %575 = vst [vmem:[%s1051_s5 + $0x10] sm:$0xff] %v328_v56  ;;  %577 = vst [vmem:[%s1051_s5 + $0x18] sm:$0xff] %v332_v57 }
  0x8c PF: > { %p578_p4 = scmp.le.s32.totalorder %s250_s27, 2 }
  0x8d   : > { %p342_p12 = scmp.lt.s32.totalorder (!%p578_p4), %s1046_s17, 2  ;;  %s382_s21 = sadd.s32 (!%p578_p4), 1, %s1046_s17 }
  0x8e   : > { %337 = sbr.rel (%p578_p4) target bundleno = 201 (0xc9), region = 48  ;;  %p1077_p13 = scmp.lt.s32.totalorder (!%p578_p4), %s382_s21, 2 }
  0x93   : > { %v338_v58 = vld [vmem:[%s1038_s4] sm:$0xff]  ;;  %v581_v59 = vld [vmem:[%s1038_s4 + $0x8] sm:$0xff]  ;;  %s343_s28 = scalar_select %p342_p12, 1, 0  ;;  %v888_v63 = vmov 0.0  }
  0x94   : > { %vm340_vm6 = vcmp.eq.f32.partialorder %v338_v58, 1.0  ;;  %s384_s7 = scalar_select %p1077_p13, 1, 0  ;;  %vm380_vm7 = vcmp.eq.f32.partialorder %v581_v59, 1.0  ;;  %vm341_vm9 = vcmp.eq.f32.partialorder %v338_v58, 0.0  ;;  %vm381_vm12 = vcmp.eq.f32.partialorder %v581_v59, 0.0 }
  0x95   : > { %v344_v60 = vstv %s343_s28  ;;  %s706_s8 = scalar_select %p342_p12, 255, 0  ;;  %v417_v2 = vld [vmem:[%s1051_s5] sm:$0xff]  ;;  %v585_v9 = vld [vmem:[%s1051_s5 + $0x8] sm:$0xff]  ;;  %v587_v47 = vld [vmem:[%s1051_s5 + $0x10] sm:$0xff] }
  0x96   : > { %vm345_vm8 = vcmp.eq.s32.totalorder %v344_v60, 1  ;;  %v385_v61 = vstv %s384_s7  ;;  %s709_s18 = scalar_select %p1077_p13, 255, 0  ;;  %v589_v48 = vld [vmem:[%s1051_s5 + $0x18] sm:$0xff] }
  0x97   : > { %vm346_vm10 = vmand %vm340_vm6, %vm345_vm8  ;;  %vm386_vm11 = vcmp.eq.s32.totalorder %v385_v61, 1  ;;  %v707_v62 = vld [vmem:[%s1032_s3] sm:%s706_s8] }
  0x98   : > { %vm387_vm13 = vmand %vm380_vm7, %vm386_vm11  ;;  %v579_v0 = vsel %vm346_vm10, 1.0, %v888_v63  ;;  %v356_v3 = vand.u32 2147483647, %v707_v62  ;;  %v710_v4 = vld [vmem:[%s1032_s3 + $0x8] sm:%s709_s18]  ;;  %v353_v25 = vmax.f32 %v707_v62, 0.0 }
  0x99   : > { %v583_v1 = vsel %vm387_vm13, 1.0, %v888_v63  ;;  %vm347_vm14 = vmand %vm341_vm9, %vm345_vm8  ;;  %v397_v6 = vand.u32 2147483647, %v710_v4  ;;  %v354_v24 = vmul.f32 %v707_v62, %v579_v0  ;;  %v394_v29 = vmax.f32 %v710_v4, 0.0 }
  0x9a   : > { %v411_v5 = vadd.f32 %v583_v1, %v579_v0  ;;  %vm388_vm15 = vmand %vm381_vm12, %vm386_vm11  ;;  %v580_v7 = vsel %vm347_vm14, 1.0, %v888_v63  ;;  %v357_v10 = vsub.f32 0.0, %v356_v3  ;;  %v395_v28 = vmul.f32 %v710_v4, %v583_v1 }
  0x9b   : > { %v584_v8 = vsel %vm388_vm15, 1.0, %v888_v63  ;;  %v398_v13 = vsub.f32 0.0, %v397_v6  ;;  %v355_v33 = vsub.f32 %v353_v25, %v354_v24 }
  0x9c   : > { %v418_v11 = vadd.f32 %v417_v2, %v411_v5  ;;  %v412_v12 = vadd.f32 %v584_v8, %v580_v7  ;;  %v358_v14 = vmul.f32 1.442695, %v357_v10  ;;  %v396_v37 = vsub.f32 %v394_v29, %v395_v28 }
  0x9d   : > { %v399_v16 = vmul.f32 1.442695, %v398_v13 }
  0x9e   : > { %419 = vst [vmem:[%s1051_s5] sm:$0xff] %v418_v11  ;;  %v422_v15 = vadd.f32 %v585_v9, %v412_v12  ;;  %711 = vpow2.f32 %v358_v14 }
  0x9f   : > { %713 = vpow2.f32 %v399_v16 }
  0xa0   : > { %586 = vst [vmem:[%s1051_s5 + $0x8] sm:$0xff] %v422_v15 }
  0xab   : > { %v712_v17 = vpop.eup %711 }
  0xac   : > { %v714_v18 = vpop.eup %713  ;;  %v360_v19 = vadd.f32 1.0, %v712_v17  ;;  %v363_v21 = vmul.f32 -0.5, %v712_v17  ;;  %v366_v26 = vand.u32 2147483647, %v712_v17 }
  0xad   : > { %v401_v20 = vadd.f32 1.0, %v714_v18  ;;  %v404_v22 = vmul.f32 -0.5, %v714_v18  ;;  %v407_v30 = vand.u32 2147483647, %v714_v18 }
  0xae   : > { %715 = vlog2.f32 %v360_v19  ;;  %v364_v23 = vadd.f32 1.0, %v363_v21  ;;  %vm367_vm0 = vcmp.lt.f32.partialorder %v366_v26, 0.0004427343 }
  0xaf   : > { %717 = vlog2.f32 %v401_v20  ;;  %v405_v27 = vadd.f32 1.0, %v404_v22  ;;  %vm408_vm1 = vcmp.lt.f32.partialorder %v407_v30, 0.0004427343 }
  0xb0   : > { %v365_v31 = vmul.f32 %v712_v17, %v364_v23 }
  0xb1   : > { %v406_v34 = vmul.f32 %v714_v18, %v405_v27 }
  0xbb   : > { %v716_v32 = vpop.eup %715 }
  0xbc   : > { %v718_v35 = vpop.eup %717  ;;  %v362_v36 = vmul.f32 0.6931472, %v716_v32 }
  0xbd   : > { %v403_v38 = vmul.f32 0.6931472, %v718_v35 }
  0xbe   : > { %v368_v39 = vsel %vm367_vm0, %v365_v31, %v362_v36 }
  0xbf   : > { %v369_v40 = vadd.f32 %v368_v39, %v355_v33  ;;  %v409_v41 = vsel %vm408_vm1, %v406_v34, %v403_v38 }
  0xc0   : > { %v410_v42 = vadd.f32 %v409_v41, %v396_v37 }
  0xc1   : > { %v372_v43 = vmul.f32 %v579_v0, %v369_v40  ;;  %v374_v44 = vmul.f32 %v580_v7, %v369_v40 }
  0xc2   : > { %v413_v45 = vmul.f32 %v583_v1, %v410_v42  ;;  %v415_v46 = vmul.f32 %v584_v8, %v410_v42 }
  0xc4   : > { %v414_v49 = vadd.f32 %v413_v45, %v372_v43  ;;  %v416_v50 = vadd.f32 %v415_v46, %v374_v44 }
  0xc6   : > { %v426_v51 = vadd.f32 %v587_v47, %v414_v49  ;;  %v430_v52 = vadd.f32 %v589_v48, %v416_v50 }
  0xc8   : > { %588 = vst [vmem:[%s1051_s5 + $0x10] sm:$0xff] %v426_v51  ;;  %590 = vst [vmem:[%s1051_s5 + $0x18] sm:$0xff] %v430_v52 }
  0xc9 PF: > { %s598_s20 = sshll.u32 %s872_s14, 9  ;;  %s446_s29 = sshll.u32 %s1051_s5, 4  ;;  %s1102_s29 = int_to_ptr.vmem [resolvable:$true] %s446_s29 }
  0xca   : > { %s1099_s3 = scalar_lea.hbm %s1159_s2, %s598_s20  ;;  %s1106_s4 = scalar_lea.sflag [#allocation4], %s229_s12 }
  0xcb   : > { %s775_s17 = scalar_lea.vmem %s1102_s29, 512  ;;  %p1171_p8 = scmp.ne.s32.totalorder %s1164_s25, 0 }
  0xcc   : > { %p776_p0 = scmp.ne.s32.totalorder %s1102_s29, %s775_s17  ;;  %s889_s14 = smov [#allocation7]  }
  0xcd   : > { %s779_s22 = sshll.u32 %s889_s14, 4  ;;  %s780_s22 = int_to_ptr.vmem [resolvable:$false] %s779_s22 }
  0xce   : > { %p777_p9 = pnand %p776_p0, %p1171_p8  ;;  %s781_s27 = scalar_lea.vmem %s780_s22, 1024 }
  0xcf   : > { %p782_p11 = scmp.lt.s32.totalorder %s1102_s29, %s780_s22  ;;  %p783_p1 = scmp.lt.s32.totalorder %s781_s27, %s775_s17 }
  0xd0   : > { %p778_p10 = pneg %p777_p9 }
  0xd1   : > { %p784_p3 = por %p783_p1, %p782_p11 }
  0xd3   : > { %p785_p7 = pnand %p784_p3, %p778_p10 }
  0xd5   : > { %788 = shalt.err (!%p785_p7)
}
  0xd6   : > { %s789_s12 = scalar_lea.hbm %s1099_s3, 512  ;;  %s793_s6 = scalar_lea.hbm %s1159_s2, 1024 }
  0xd7   : > { %p790_p6 = scmp.ne.s32.totalorder %s1099_s3, %s789_s12  ;;  %p794_p4 = scmp.lt.s32.totalorder %s1099_s3, %s1159_s2 }
  0xd8   : > { %p795_p12 = scmp.lt.s32.totalorder %s793_s6, %s789_s12 }
  0xd9   : > { %p791_p5 = pnand %p790_p6, %p1171_p8 }
  0xda   : > { %p796_p13 = por %p795_p12, %p794_p4 }
  0xdb   : > { %p792_p2 = pneg %p791_p5 }
  0xdd   : > { %p797_p0 = pnand %p796_p13, %p792_p2 }
  0xdf   : > { %800 = shalt.err (!%p797_p0)
}
  0xe0   : > { %s890_s8 = smov 128   ;;  %s891_s18 = smov 8  }
  0xe1   : > { %603 = dma.vmem_to_hbm [thread:$0]  (%p1171_p8), %s1102_s29, 512, %s1099_s3, %s1106_s4, %s890_s8, %s890_s8, %s891_s18  }
  0xe2 PF: > { %s461_s20 = sand.u32 1, %s852_s9   ;;  %p1172_p9 = scmp.ne.s32.totalorder %s1165_s26, 0 }
  0xe3   : > { %p1173_p10 = scmp.ge.s32.totalorder %s880_s16, 2  ;;  %s462_s23 = scalar_lea.sflag [#allocation4], %s461_s20 }
  0xe5   : > { %p613_p11 = pnand %p1173_p10, %p1172_p9 }
  0xe7   : > { %p614_p1 = pneg %p613_p11 }
  0xe9   : > { %846 = dma.done.wait (%p614_p1), %s462_s23, 512  }
  0xea   : > { %848 = vsyncadd (%p614_p1), %s462_s23, 4294966784  ;;  %s21_s16 = sadd.s32 1, %s880_s16   ;;  %s1174_s9 = smov %s856_s10 }
  0xeb   : > { %p18_p3 = scmp.ge.s32.totalorder %s21_s16, 4   ;;  %s1175_s10 = smov %s860_s11 }
  0xec   : > { %s1176_s11 = smov %s965_s24  ;;  %s1177_s12 = smov %s868_s13 }
  0xed   : > { %s1147_s13 = smov 0   ;;  %s1178_s14 = smov %s876_s15 }
  0xee   : > { %s1179_s15 = smov %s1181_s19  ;;  %20 = sbr.rel (!%p18_p3) target bundleno = 9 (0x9), region = 108 }
  0xf3   :  { %467 = vsyncpa [#allocation3], 1 }
  0xf4   :  { %469 = vsyncpa [#allocation3 + $0x1], 1 }
  0xf5   :  { %470 = vsyncpa [#allocation6], 1 }
  0xf6   :  { %472 = vsyncpa [#allocation6 + $0x1], 1 }
  0xf7   :  { %473 = vsyncpa [#allocation4], 1 }
  0xf8   :  { %475 = vsyncpa [#allocation4 + $0x1], 1 }

</bundles_post_ra>
